<compile_context>
chip_gen: v7x
topology: tpu7x:2x2x1
jax: 0.10.0
libtpu: 0.0.40
codegen_flags: <defaults>
</compile_context>

<pallas_src>
import jax
import jax.numpy as jnp
from jax.experimental import pallas as pl
from jax.experimental.pallas import tpu as pltpu


def repatch_kernel(a_ref, b_ref, wd_ref, db_ref, o0_ref, o1_ref):
    """One (n, m)-tile: patch-up logit-diff matmul, sigmoid, cross combine.

    a_ref, b_ref : (1, C, TM)   lane-dense input pixels
    wd_ref       : (PP, C)      (W[:,0] - W[:,1])^T
    db_ref       : (1, 1)       b[0] - b[1]
    o0_ref/o1_ref: (1, PP, TM)  spA channel 0 / channel 1 (pre depth-to-space)
    """
    xa = a_ref[0]                       # (C, TM)
    xb = b_ref[0]                       # (C, TM)
    wd = wd_ref[...]                    # (PP, C)
    db = db_ref[...]                    # (1, 1) -> broadcasts

    # logit difference (y0 - y1) for every upscaled output pixel (MXU, K = C)
    za = jnp.dot(wd, xa, preferred_element_type=jnp.float32) + db  # (PP, TM)
    zb = jnp.dot(wd, xb, preferred_element_type=jnp.float32) + db

    # 2-way softmax == sigmoid(logit difference); safe for large |z|.
    pa = 1.0 / (1.0 + jnp.exp(-za))     # P(channel 0 | a)
    pb = 1.0 / (1.0 + jnp.exp(-zb))     # P(channel 0 | b)

    # spA[0] = pa0*pb0 + pa1*pb1 ; spA[1] = 1 - spA[0]
    out0 = pa * pb + (1.0 - pa) * (1.0 - pb)
    o0_ref[0] = out0
    o1_ref[0] = 1.0 - out0


def _choose_tile(hw, cap=2048):
    """Largest multiple of 128 that divides hw (capped); else full extent."""
    best = 0
    t = 128
    while t <= min(hw, cap):
        if hw % t == 0:
            best = t
        t += 128
    return best if best else hw


def repatch_forward(a, b, weight, bias, patch_size):
    """a, b: (N, C, H, W) f32; weight: (C, 2, P, P); bias: (2,).
    Returns (N, 2, H*P, W*P) f32, matching PyTorch Repatch.forward."""
    N, C, H, W = a.shape
    P = patch_size
    PP = P * P
    HW = H * W

    # Lane-dense views of NCHW (free reshapes, no wrapper transpose).
    a3 = a.reshape(N, C, HW).astype(jnp.float32)
    b3 = b.reshape(N, C, HW).astype(jnp.float32)

    # Logit-difference weight / bias (2-way softmax -> sigmoid).
    w0 = weight[:, 0].reshape(C, PP)
    w1 = weight[:, 1].reshape(C, PP)
    wd = jnp.transpose(w0 - w1).astype(jnp.float32)              # (PP, C)
    db = (bias[0] - bias[1]).astype(jnp.float32).reshape(1, 1)   # (1, 1)

    tm = _choose_tile(HW)
    grid = (N, HW // tm)   # both axes independent -> both "parallel" (v7x megacore)

    out0, out1 = pl.pallas_call(
        repatch_kernel,
        out_shape=(jax.ShapeDtypeStruct((N, PP, HW), jnp.float32),
                   jax.ShapeDtypeStruct((N, PP, HW), jnp.float32)),
        grid=grid,
        in_specs=[
            pl.BlockSpec((1, C, tm), lambda n, m: (n, 0, m)),
            pl.BlockSpec((1, C, tm), lambda n, m: (n, 0, m)),
            pl.BlockSpec((PP, C), lambda n, m: (0, 0)),
            pl.BlockSpec((1, 1), lambda n, m: (0, 0)),
        ],
        out_specs=[
            pl.BlockSpec((1, PP, tm), lambda n, m: (n, 0, m)),
            pl.BlockSpec((1, PP, tm), lambda n, m: (n, 0, m)),
        ],
        compiler_params=pltpu.CompilerParams(
            dimension_semantics=("parallel", "parallel")),
    )(a3, b3, wd, db)

    # Depth-to-space back to (N, 2, H*P, W*P).
    # TODO(synk): fuse this depth-to-space into the kernel's output BlockSpec
    # (grid over rows + lane interleave of pw into W*P) to avoid the extra HBM
    # round trip of the output tensor.
    def d2s(o):
        o = o.reshape(N, P, P, H, W)              # (n, ph, pw, h, w)
        o = jnp.transpose(o, (0, 3, 1, 4, 2))     # (n, h, ph, w, pw)
        return o.reshape(N, H * P, W * P)

    return jnp.stack([d2s(out0), d2s(out1)], axis=1)


def repatch_reference(a, b, weight, bias, P):
    """Plain-JAX reference mirroring the PyTorch module (for validation)."""
    def patchup(x):
        y = jnp.einsum('nchw,copq->nohpwq', x, weight)      # (N,2,H,P,W,P)
        N, O, H, _, W, _ = y.shape
        y = y.reshape(N, O, H * P, W * P)
        return y + bias.reshape(1, 2, 1, 1)
    x1 = jax.nn.softmax(patchup(a), axis=1)
    x2 = jax.nn.softmax(patchup(b), axis=1)
    sp0 = x1[:, 0] * x2[:, 0] + x1[:, 1] * x2[:, 1]
    sp1 = x1[:, 1] * x2[:, 0] + x1[:, 0] * x2[:, 1]
    return jnp.stack([sp0, sp1], axis=1)


if __name__ == "__main__":
    N, C, H, W = 2, 4, 16, 16
    P = 4  # patch_size

    key = jax.random.PRNGKey(0)
    k_a, k_b, k_w, k_bias = jax.random.split(key, 4)

    a = jax.random.normal(k_a, (N, C, H, W), dtype=jnp.float32)
    b = jax.random.normal(k_b, (N, C, H, W), dtype=jnp.float32)

    # Deterministic parameter init (shapes match nn.ConvTranspose2d(C, 2, P, P))
    bound = 1.0 / jnp.sqrt(jnp.float32(C * P * P))
    weight = jax.random.uniform(k_w, (C, 2, P, P), jnp.float32, -bound, bound)
    bias = jax.random.uniform(k_bias, (2,), jnp.float32, -bound, bound)

    out = repatch_forward(a, b, weight, bias, P)
    out = jax.block_until_ready(out)

    ref = repatch_reference(a, b, weight, bias, P)
    assert out.shape == (N, 2, H * P, W * P)
    assert jnp.allclose(out, ref, atol=1e-5, rtol=1e-5), "mismatch vs reference"

    print("KERNEL_OK")
</pallas_src>

<mosaic_0001>
module attributes {stable_mosaic.version = 11 : i64} {
  func.func @repatch_kernel(%arg0: i32, %arg1: i32, %arg2: memref<1x4x256xf32, #tpu.memory_space<vmem>>, %arg3: memref<1x4x256xf32, #tpu.memory_space<vmem>>, %arg4: memref<16x4xf32, #tpu.memory_space<vmem>>, %arg5: memref<1x1xf32, #tpu.memory_space<vmem>>, %arg6: memref<1x16x256xf32, #tpu.memory_space<vmem>>, %arg7: memref<1x16x256xf32, #tpu.memory_space<vmem>>) attributes {dimension_semantics = [#tpu.dimension_semantics<parallel>, #tpu.dimension_semantics<parallel>], iteration_bounds = array<i64: 2, 1>, scalar_prefetch = 0 : i64, scratch_operands = 0 : i64, tpu.core_type = #tpu.core_type<tc>, window_params = [{transform_indices = @transform_0, window_bounds = array<i64: 1, 4, 256>}, {transform_indices = @transform_1, window_bounds = array<i64: 1, 4, 256>}, {pipeline_mode = #tpu.pipeline_mode<synchronous>, transform_indices = @transform_2, window_bounds = array<i64: 16, 4>}, {pipeline_mode = #tpu.pipeline_mode<synchronous>, transform_indices = @transform_3, window_bounds = array<i64: 1, 1>}, {transform_indices = @transform_4, window_bounds = array<i64: 1, 16, 256>}, {transform_indices = @transform_5, window_bounds = array<i64: 1, 16, 256>}]} {
    %c0 = arith.constant 0 : index
    %c0_0 = arith.constant 0 : index
    %c0_1 = arith.constant 0 : index
    %0 = vector.load %arg2[%c0, %c0_0, %c0_1] : memref<1x4x256xf32, #tpu.memory_space<vmem>>, vector<1x4x256xf32>
    %1 = vector.shape_cast %0 : vector<1x4x256xf32> to vector<4x256xf32>
    %c0_2 = arith.constant 0 : index
    %c0_3 = arith.constant 0 : index
    %c0_4 = arith.constant 0 : index
    %2 = vector.load %arg3[%c0_2, %c0_3, %c0_4] : memref<1x4x256xf32, #tpu.memory_space<vmem>>, vector<1x4x256xf32>
    %3 = vector.shape_cast %2 : vector<1x4x256xf32> to vector<4x256xf32>
    %c0_5 = arith.constant 0 : index
    %c0_6 = arith.constant 0 : index
    %4 = vector.load %arg4[%c0_5, %c0_6] : memref<16x4xf32, #tpu.memory_space<vmem>>, vector<16x4xf32>
    %c0_7 = arith.constant 0 : index
    %c0_8 = arith.constant 0 : index
    %5 = vector.load %arg5[%c0_7, %c0_8] : memref<1x1xf32, #tpu.memory_space<vmem>>, vector<1x1xf32>
    %cst = arith.constant dense<0.000000e+00> : vector<16x256xf32>
    %6 = tpu.matmul %4, %1, %cst {dimension_numbers = #tpu.dot_dimension_numbers<[1], [0], [0], [1], [0, 0, 1, 1], [], []>} : vector<16x4xf32>, vector<4x256xf32>, vector<16x256xf32> -> vector<16x256xf32>
    %7 = vector.broadcast %5 : vector<1x1xf32> to vector<16x256xf32>
    %8 = arith.addf %6, %7 : vector<16x256xf32>
    %cst_9 = arith.constant dense<0.000000e+00> : vector<16x256xf32>
    %9 = tpu.matmul %4, %3, %cst_9 {dimension_numbers = #tpu.dot_dimension_numbers<[1], [0], [0], [1], [0, 0, 1, 1], [], []>} : vector<16x4xf32>, vector<4x256xf32>, vector<16x256xf32> -> vector<16x256xf32>
    %10 = vector.broadcast %5 : vector<1x1xf32> to vector<16x256xf32>
    %11 = arith.addf %9, %10 : vector<16x256xf32>
    %cst_10 = arith.constant 0.000000e+00 : f32
    %12 = vector.broadcast %cst_10 : f32 to vector<16x256xf32>
    %13 = arith.subf %12, %8 : vector<16x256xf32>
    %14 = math.exp %13 : vector<16x256xf32>
    %cst_11 = arith.constant 1.000000e+00 : f32
    %15 = vector.broadcast %cst_11 : f32 to vector<16x256xf32>
    %16 = arith.addf %15, %14 : vector<16x256xf32>
    %cst_12 = arith.constant 1.000000e+00 : f32
    %17 = vector.broadcast %cst_12 : f32 to vector<16x256xf32>
    %18 = arith.divf %17, %16 : vector<16x256xf32>
    %cst_13 = arith.constant 0.000000e+00 : f32
    %19 = vector.broadcast %cst_13 : f32 to vector<16x256xf32>
    %20 = arith.subf %19, %11 : vector<16x256xf32>
    %21 = math.exp %20 : vector<16x256xf32>
    %cst_14 = arith.constant 1.000000e+00 : f32
    %22 = vector.broadcast %cst_14 : f32 to vector<16x256xf32>
    %23 = arith.addf %22, %21 : vector<16x256xf32>
    %cst_15 = arith.constant 1.000000e+00 : f32
    %24 = vector.broadcast %cst_15 : f32 to vector<16x256xf32>
    %25 = arith.divf %24, %23 : vector<16x256xf32>
    %26 = arith.mulf %18, %25 : vector<16x256xf32>
    %cst_16 = arith.constant 1.000000e+00 : f32
    %27 = vector.broadcast %cst_16 : f32 to vector<16x256xf32>
    %28 = arith.subf %27, %18 : vector<16x256xf32>
    %cst_17 = arith.constant 1.000000e+00 : f32
    %29 = vector.broadcast %cst_17 : f32 to vector<16x256xf32>
    %30 = arith.subf %29, %25 : vector<16x256xf32>
    %31 = arith.mulf %28, %30 : vector<16x256xf32>
    %32 = arith.addf %26, %31 : vector<16x256xf32>
    %c0_18 = arith.constant 0 : index
    %c0_19 = arith.constant 0 : index
    %c0_20 = arith.constant 0 : index
    %33 = vector.load %arg6[%c0_18, %c0_19, %c0_20] : memref<1x16x256xf32, #tpu.memory_space<vmem>>, vector<1x16x256xf32>
    %34 = vector.shape_cast %33 : vector<1x16x256xf32> to vector<16x256xf32>
    %35 = vector.shape_cast %32 : vector<16x256xf32> to vector<1x16x256xf32>
    tpu.vector_store %arg6[%c0_18, %c0_19, %c0_20], %35 {strides = array<i32>} : memref<1x16x256xf32, #tpu.memory_space<vmem>>, vector<1x16x256xf32>,
    %cst_21 = arith.constant 1.000000e+00 : f32
    %36 = vector.broadcast %cst_21 : f32 to vector<16x256xf32>
    %37 = arith.subf %36, %32 : vector<16x256xf32>
    %c0_22 = arith.constant 0 : index
    %c0_23 = arith.constant 0 : index
    %c0_24 = arith.constant 0 : index
    %38 = vector.load %arg7[%c0_22, %c0_23, %c0_24] : memref<1x16x256xf32, #tpu.memory_space<vmem>>, vector<1x16x256xf32>
    %39 = vector.shape_cast %38 : vector<1x16x256xf32> to vector<16x256xf32>
    %40 = vector.shape_cast %37 : vector<16x256xf32> to vector<1x16x256xf32>
    tpu.vector_store %arg7[%c0_22, %c0_23, %c0_24], %40 {strides = array<i32>} : memref<1x16x256xf32, #tpu.memory_space<vmem>>, vector<1x16x256xf32>,
    return
  }
  func.func @transform_0(%arg0: i32, %arg1: i32) -> (i32, i32, i32) {
    %c0_i32 = arith.constant 0 : i32
    %c0_i32_0 = arith.constant 0 : i32
    return %arg0, %c0_i32, %arg1 : i32, i32, i32
  }
  func.func @transform_1(%arg0: i32, %arg1: i32) -> (i32, i32, i32) {
    %c0_i32 = arith.constant 0 : i32
    %c0_i32_0 = arith.constant 0 : i32
    return %arg0, %c0_i32, %arg1 : i32, i32, i32
  }
  func.func @transform_2(%arg0: i32, %arg1: i32) -> (i32, i32) {
    %c0_i32 = arith.constant 0 : i32
    %c0_i32_0 = arith.constant 0 : i32
    %c0_i32_1 = arith.constant 0 : i32
    return %c0_i32, %c0_i32_0 : i32, i32
  }
  func.func @transform_3(%arg0: i32, %arg1: i32) -> (i32, i32) {
    %c0_i32 = arith.constant 0 : i32
    %c0_i32_0 = arith.constant 0 : i32
    %c0_i32_1 = arith.constant 0 : i32
    return %c0_i32, %c0_i32_0 : i32, i32
  }
  func.func @transform_4(%arg0: i32, %arg1: i32) -> (i32, i32, i32) {
    %c0_i32 = arith.constant 0 : i32
    %c0_i32_0 = arith.constant 0 : i32
    return %arg0, %c0_i32, %arg1 : i32, i32, i32
  }
  func.func @transform_5(%arg0: i32, %arg1: i32) -> (i32, i32, i32) {
    %c0_i32 = arith.constant 0 : i32
    %c0_i32_0 = arith.constant 0 : i32
    return %arg0, %c0_i32, %arg1 : i32, i32, i32
  }
}

</mosaic_0001>

<bundles_post_ra>
// kernel: tpu_custom_call.1
= control target key start
LH: loop header
LB: loop body
LE: loop exit
PB: predicated region body
PF: predicated region fallthrough
CT: control target
= control target key end

     0   :  { %s1316_s0 = inlined_call_operand.vmem [shape: f32[2,4,256], index: 0, kind: input, shape index: {}]   ;;  %s1317_s1 = inlined_call_operand.hbm [shape: f32[2,4,256], index: 1, kind: input, shape index: {}]   ;;  %s1318_s2 = inlined_call_operand.vmem [shape: f32[16,4], index: 2, kind: input, shape index: {}]   ;;  %s1319_s3 = inlined_call_operand.<no memory space> [shape: f32[1,1], index: 3, kind: input, shape index: {}]   ;;  %s1320_s4 = inlined_call_operand.hbm [shape: f32[2,16,256], index: 4, kind: output, shape index: {0}]   ;;  %s1321_s5 = inlined_call_operand.hbm [shape: f32[2,16,256], index: 5, kind: output, shape index: {1}]  }
   0x1   :  { %v11_v0 = vstv %s1319_s3 }
   0x2   :  { %12 = vst [vmem:[#allocation2] sm:$0x1] %v11_v0 }
   0x3   :  { %13 = vsyncpa [#allocation4], 0 }
   0x4   :  { %15 = vsyncpa [#allocation4 + $0x1], 0 }
   0x5   :  { %16 = vsyncpa [#allocation5], 0 }
   0x6   :  { %18 = vsyncpa [#allocation5 + $0x1], 0 }
   0x7   :  { %19 = vsyncpa [#allocation8], 0 }
   0x8   :  { %21 = vsyncpa [#allocation8 + $0x1], 0  ;;  %s1086_s20 = smov 0   ;;  %s1088_s21 = smov 0  }
   0x9   :  { %s1090_s22 = smov 0   ;;  %s1092_s23 = smov 0  }
   0xa   :  { %s1094_s24 = smov 0   ;;  %s1096_s25 = smov 0  }
   0xb LB: > { %s760_s3 = sadd.s32 4294967295, %s1044_s25   ;;  %s761_s26 = sadd.s32 4294967294, %s1044_s25   ;;  %s1044_s25 = sphi %s1096_s25, %s27_s25   ;;  %s1040_s24 = sphi %s1094_s24, %s1337_s24   ;;  %s1036_s23 = sphi %s1092_s23, %s1336_s23   ;;  %s1032_s22 = sphi %s1090_s22, %s1335_s22   ;;  %s1028_s21 = sphi %s1088_s21, %s1334_s21   ;;  %s1024_s20 = sphi %s1086_s20, %s1333_s20  }
   0xc   : > { %s39_s27 = sadd.s32 1, %s1040_s24  ;;  %s76_s28 = sadd.s32 1, %s1032_s22 }
   0xd   : > { %p41_p0 = scmp.ge.s32.totalorder %s39_s27, 2  ;;  %p83_p1 = scmp.ne.s32.totalorder %s1032_s22, %s1028_s21 }
   0xe   : > { %p84_p2 = scmp.eq.s32.totalorder %s1044_s25, 0  ;;  %p89_p3 = scmp.ne.s32.totalorder %s1028_s21, %s1024_s20 }
   0xf   : > { %s1339_s27 = smov (%p41_p0, %s39_s27), 0  ;;  %p90_p5 = scmp.eq.s32.totalorder %s760_s3, 0 }
  0x10   : > { %p1127_p4 = por %p84_p2, %p83_p1  ;;  %s71_s30 = ssub.s32 %s1040_s24, %s1339_s27 }
  0x11   : > { %p157_p6 = scmp.eq.s32.totalorder %s760_s3, 1  ;;  %p74_p7 = scmp.eq.s32.totalorder %s71_s30, 0 }
  0x12   : > { %p1133_p8 = por %p90_p5, %p89_p3  ;;  %p163_p10 = scmp.eq.s32.totalorder %s761_s26, 1 }
  0x13   : > { %p1137_p9 = por %p157_p6, %p83_p1  ;;  %p811_p13 = scmp.lt.s32.totalorder %s1044_s25, 2 }
  0x14   : > { %s1142_s8 = scalar_select %p74_p7, %s1032_s22, %s76_s28  }
  0x15   : > { %s1325_s7 = scalar_select %p1137_p9, 1, 0 }
  0x16   : > { %p1144_p11 = por %p163_p10, %p89_p3  ;;  %s230_s10 = sand.u32 1, %s1032_s22  }
  0x17   : > { %s764_s11 = sshll.u32 %s230_s10, 3  ;;  %s790_s12 = sshll.u32 %s1040_s24, 7 }
  0x18   : > { %s1326_s9 = scalar_select %p1144_p11, 1, 0 }
  0x19   : > { %s1155_s15 = scalar_lea.hbm %s1317_s1, %s790_s12  ;;  %s234_s16 = scalar_lea.vmem [#allocation3], %s764_s11 }
  0x1a   : > { %s244_s17 = sshll.u32 %s234_s16, 4  ;;  %p1161_p0 = pnand %p811_p13, %p1127_p4  ;;  %s1157_s17 = int_to_ptr.vmem [resolvable:$true] %s244_s17 }
  0x1b   : > { %s231_s19 = scalar_lea.sflag [#allocation4], %s230_s10  ;;  %s900_s3 = scalar_lea.hbm %s1155_s15, 128 }
  0x1c   : > { %p901_p3 = scmp.ne.s32.totalorder %s1155_s15, %s900_s3  ;;  %p902_p5 = pneg %p1161_p0 }
  0x1d   : > { %s905_s29 = scalar_lea.hbm %s1317_s1, 256  ;;  %p906_p4 = scmp.lt.u32.totalorder %s1155_s15, %s1317_s1 }
  0x1e   : > { %p903_p6 = pnand %p902_p5, %p901_p3  ;;  %p907_p10 = scmp.lt.u32.totalorder %s905_s29, %s900_s3 }
  0x1f   : > { %p909_p12 = scmp.lt.u32.totalorder %s900_s3, %s1155_s15 }
  0x20   : > { %p904_p7 = pneg %p903_p6  ;;  %p908_p13 = por %p907_p10, %p906_p4 }
  0x22   : > { %p910_p1 = por %p909_p12, %p908_p13 }
  0x24   : > { %p911_p2 = pnand %p910_p1, %p904_p7 }
  0x26   : > { %914 = shalt.err (!%p911_p2)
}
  0x27   : > { %s915_s10 = scalar_lea.vmem %s1157_s17, 128  ;;  %s1046_s12 = smov [#allocation3]  }
  0x28   : > { %p916_p3 = scmp.ne.s32.totalorder %s1157_s17, %s915_s10  ;;  %s920_s13 = sshll.u32 %s1046_s12, 4  ;;  %s921_s13 = int_to_ptr.vmem [resolvable:$false] %s920_s13 }
  0x29   : > { %s922_s14 = scalar_lea.vmem %s921_s13, 256  ;;  %p923_p9 = scmp.lt.s32.totalorder %s1157_s17, %s921_s13 }
  0x2a   : > { %p918_p6 = pnand %p916_p3, %p902_p5  ;;  %p924_p4 = scmp.lt.s32.totalorder %s922_s14, %s915_s10 }
  0x2c   : > { %p919_p11 = pneg %p918_p6  ;;  %p925_p10 = por %p924_p4, %p923_p9 }
  0x2e   : > { %p926_p12 = pnand %p925_p10, %p919_p11 }
  0x30   : > { %929 = shalt.err (!%p926_p12)
}
  0x31   : > { %803 = dma.hbm_to_vmem [thread:$0]  (!%p1161_p0), %s1155_s15, 128, %s1157_s17, %s231_s19  }
  0x32   : > { %p1328_p1 = scmp.lt.s32.totalorder %s1044_s25, 3  ;;  %p1329_p2 = scmp.ge.s32.totalorder %s1044_s25, 1 }
  0x34   : > { %p250_p5 = pnand %p1329_p2, %p1328_p1 }
  0x35   : > { %s1197_s16 = sand.u32 (!%p250_p5), 1, %s1028_s21  }
  0x36   : > { %253 = sbr.rel (%p250_p5) target bundleno = 367 (0x16f), region = 36  ;;  %s768_s3 = sshll.u32 (!%p250_p5), %s1197_s16, 3 }
  0x37   : > { %s256_s26 = scalar_lea.sflag (!%p250_p5), [#allocation4], %s1197_s16  ;;  %s259_s28 = scalar_lea.vmem (!%p250_p5), [#allocation3], %s768_s3 }
  0x3d   : > { %1011 = dma.done.wait (%p1133_p8), %s256_s26, 128  }
  0x3e   : > { %1013 = vsyncadd (%p1133_p8), %s256_s26, 4294967168  ;;  %p301_p9 = scmp.lt.s32.totalorder %s1036_s23, 1  ;;  %v1047_v1 = vmov 0.0   ;;  %v1048_v2 = vmov 0   ;;  %vm336_vm0 = vcmask 1043456   ;;  %v314_v4 = vld [vmem:[%s259_s28] sm:$0xff] }
  0x3f   : > { %405 = vmatprep.mubr.f32.mxu0 %v1047_v1  ;;  %488 = vmatprep.mubr.f32.mxu1 %v1047_v1  ;;  %v419_v6 = vcombine.high %v314_v4, %v314_v4  ;;  %v773_v7 = vld [vmem:[#allocation2] ss:$0 sm:$0xff]  ;;  %vm329_vm1 = vcmask 31744   ;;  %v316_v9 = vld [vmem:[%s1318_s2 + $0x8] sm:$0xff]  ;;  %s769_s12 = sshll.u32 %s1197_s16, 5  ;;  %s792_s14 = sshll.u32 %s1036_s23, 9 }
  0x40   : > { %s302_s15 = scalar_select %p301_p9, %s1036_s23, 1  ;;  %865 = vset.pattern.permute.xlu0 %v1048_v2  ;;  %v315_v8 = vld [vmem:[%s1318_s2] sm:$0xff] }
  0x41   : > { %324 = vperm.xlu0 %865, %v773_v7   ;;  %778 = vmatprep.subr.msk.mxu1 %vm336_vm0, %v419_v6  ;;  %s292_s13 = scalar_lea.vmem [#allocation6], %s769_s12  ;;  %s1218_s26 = scalar_lea.vmem [#allocation7], %s769_s12 }
  0x42   : > { %s791_s17 = sshll.u32 %s302_s15, 3  ;;  %779 = vmatpush1.msk.msra.mxu1 %vm336_vm0, %v314_v4  ;;  %s602_s3 = sshll.u32 %s292_s13, 4  ;;  %s1226_s3 = int_to_ptr.vmem [resolvable:$true] %s602_s3 }
  0x43   : > { %s308_s29 = scalar_lea.vmem %s1316_s0, %s791_s17  ;;  %780 = vmatmul.mubr.msk.f32.vlgmr.msra.gmra.mrb[0].mxu1 %vm329_vm1, %v315_v8  ;;  %s1224_s17 = scalar_lea.hbm %s1320_s4, %s792_s14 }
  0x44   : > { %v313_v3 = vld [vmem:[%s308_s29] sm:$0xff]  ;;  %494 = vmatprep.mubr.f32.mxu1 %v1047_v1  ;;  %s620_s23 = sshll.u32 %s1218_s26, 4  ;;  %s1234_s29 = scalar_lea.hbm %s1321_s5, %s792_s14  ;;  %s1236_s23 = int_to_ptr.vmem [resolvable:$true] %s620_s23 }
  0x45   : > { %v328_v5 = vcombine.high %v313_v3, %v313_v3  ;;  %s582_s6 = scalar_lea.sflag [#allocation5], %s1197_s16  ;;  %s930_s30 = scalar_lea.vmem %s1226_s3, 512 }
  0x46   : > { %p931_p8 = scmp.ne.s32.totalorder %s1226_s3, %s930_s30  ;;  %p1330_p11 = scmp.ne.s32.totalorder %s1325_s7, 0 }
  0x47   : > { %774 = vmatprep.subr.msk.mxu0 %vm336_vm0, %v328_v5  ;;  %781 = vmatmul.mubr.msk.f32.gmra.mrb[2].mxu1 %vm329_vm1, %v316_v9  ;;  %s1049_s11 = smov [#allocation6]  }
  0x48   : > { %775 = vmatpush1.msk.msra.mxu0 %vm336_vm0, %v313_v3  ;;  %p932_p0 = pnand %p931_p8, %p1330_p11  ;;  %s934_s10 = sshll.u32 %s1049_s11, 4  ;;  %s935_s10 = int_to_ptr.vmem [resolvable:$false] %s934_s10 }
  0x49   : > { %776 = vmatmul.mubr.msk.f32.vlgmr.msra.gmra.mrb[0].mxu0 %vm329_vm1, %v315_v8  ;;  %s936_s12 = scalar_lea.vmem %s935_s10, 1024  ;;  %p937_p13 = scmp.lt.s32.totalorder %s1226_s3, %s935_s10 }
  0x4a   : > { %411 = vmatprep.mubr.f32.mxu0 %v1047_v1  ;;  %p933_p7 = pneg %p932_p0  ;;  %p938_p3 = scmp.lt.s32.totalorder %s936_s12, %s930_s30 }
  0x4c   : > { %p939_p6 = por %p938_p3, %p937_p13 }
  0x4d   : > { %777 = vmatmul.mubr.msk.f32.gmra.mrb[2].mxu0 %vm329_vm1, %v316_v9 }
  0x4e   : > { %p940_p4 = pnand %p939_p6, %p933_p7 }
  0xc0   : > { %v325_v10 = vpop.permute.xlu0 %324 }
 0x116   : > { %v490_v12 = vpop.f32.mrb[0].mxu1 }
 0x117   : > { %v491_v14 = vadd.f32 %v490_v12, %v325_v10  ;;  %v492_v16 = vpop.f32.mrb[1].mxu1 }
 0x118   : > { %v493_v18 = vadd.f32 %v492_v16, %v325_v10 }
 0x119   : > { %v525_v20 = vsub.f32 0.0, %v491_v14 }
 0x11a   : > { %v526_v22 = vsub.f32 0.0, %v493_v18  ;;  %v496_v24 = vpop.f32.mrb[2].mxu1 }
 0x11b   : > { %v529_v26 = vmul.f32 1.442695, %v525_v20  ;;  %v497_v28 = vadd.f32 %v496_v24, %v325_v10  ;;  %v498_v30 = vpop.f32.mrb[3].mxu1 }
 0x11c   : > { %v407_v11 = vpop.f32.mrb[0].mxu0  ;;  %v531_v32 = vmul.f32 1.442695, %v526_v22  ;;  %v499_v34 = vadd.f32 %v498_v30, %v325_v10 }
 0x11d   : > { %v408_v13 = vadd.f32 %v407_v11, %v325_v10  ;;  %v409_v15 = vpop.f32.mrb[1].mxu0  ;;  %v527_v36 = vsub.f32 0.0, %v497_v28 }
 0x11e   : > { %v410_v17 = vadd.f32 %v409_v15, %v325_v10  ;;  %v528_v38 = vsub.f32 0.0, %v499_v34 }
 0x11f   : > { %v501_v19 = vsub.f32 0.0, %v408_v13  ;;  %v533_v40 = vmul.f32 1.442695, %v527_v36 }
 0x120   : > { %v502_v21 = vsub.f32 0.0, %v410_v17  ;;  %v413_v23 = vpop.f32.mrb[2].mxu0  ;;  %v535_v42 = vmul.f32 1.442695, %v528_v38 }
 0x121   : > { %v505_v25 = vmul.f32 1.442695, %v501_v19  ;;  %v414_v27 = vadd.f32 %v413_v23, %v325_v10  ;;  %v415_v29 = vpop.f32.mrb[3].mxu0 }
 0x122   : > { %v507_v31 = vmul.f32 1.442695, %v502_v21  ;;  %v416_v33 = vadd.f32 %v415_v29, %v325_v10 }
 0x123   : > { %868 = vpow2.f32 %v505_v25  ;;  %v503_v35 = vsub.f32 0.0, %v414_v27 }
 0x124   : > { %870 = vpow2.f32 %v529_v26  ;;  %v504_v37 = vsub.f32 0.0, %v416_v33 }
 0x125   : > { %872 = vpow2.f32 %v507_v31  ;;  %v509_v39 = vmul.f32 1.442695, %v503_v35 }
 0x126   : > { %874 = vpow2.f32 %v531_v32  ;;  %v511_v41 = vmul.f32 1.442695, %v504_v37 }
 0x127   : > { %876 = vpow2.f32 %v509_v39 }
 0x128   : > { %878 = vpow2.f32 %v533_v40 }
 0x129   : > { %880 = vpow2.f32 %v511_v41 }
 0x12a   : > { %882 = vpow2.f32 %v535_v42 }
 0x12d   : > { %v869_v43 = vpop.eup %868 }
 0x12e   : > { %v871_v44 = vpop.eup %870  ;;  %v513_v45 = vadd.f32 1.0, %v869_v43 }
 0x12f   : > { %v873_v46 = vpop.eup %872  ;;  %v537_v47 = vadd.f32 1.0, %v871_v44 }
 0x130   : > { %v875_v48 = vpop.eup %874  ;;  %884 = vrcp.f32 %v513_v45  ;;  %v514_v49 = vadd.f32 1.0, %v873_v46 }
 0x131   : > { %v877_v50 = vpop.eup %876  ;;  %886 = vrcp.f32 %v537_v47  ;;  %v538_v51 = vadd.f32 1.0, %v875_v48 }
 0x132   : > { %v879_v52 = vpop.eup %878  ;;  %888 = vrcp.f32 %v514_v49  ;;  %v515_v53 = vadd.f32 1.0, %v877_v50 }
 0x133   : > { %v881_v54 = vpop.eup %880  ;;  %890 = vrcp.f32 %v538_v51  ;;  %v539_v55 = vadd.f32 1.0, %v879_v52 }
 0x134   : > { %v883_v56 = vpop.eup %882  ;;  %892 = vrcp.f32 %v515_v53  ;;  %v516_v57 = vadd.f32 1.0, %v881_v54 }
 0x135   : > { %894 = vrcp.f32 %v539_v55  ;;  %v540_v58 = vadd.f32 1.0, %v883_v56 }
 0x136   : > { %896 = vrcp.f32 %v516_v57 }
 0x137   : > { %898 = vrcp.f32 %v540_v58 }
 0x13a   : > { %v885_v59 = vpop.eup %884 }
 0x13b   : > { %v887_v60 = vpop.eup %886  ;;  %v553_v61 = vsub.f32 1.0, %v885_v59 }
 0x13c   : > { %v889_v62 = vpop.eup %888  ;;  %v549_v63 = vmul.f32 %v887_v60, %v885_v59  ;;  %v557_v0 = vsub.f32 1.0, %v887_v60 }
 0x13d   : > { %v891_v1 = vpop.eup %890  ;;  %v554_v2 = vsub.f32 1.0, %v889_v62 }
 0x13e   : > { %v893_v3 = vpop.eup %892  ;;  %v561_v4 = vmul.f32 %v557_v0, %v553_v61  ;;  %v550_v5 = vmul.f32 %v891_v1, %v889_v62  ;;  %v558_v6 = vsub.f32 1.0, %v891_v1 }
 0x13f   : > { %v895_v7 = vpop.eup %894  ;;  %v555_v8 = vsub.f32 1.0, %v893_v3 }
 0x140   : > { %v897_v9 = vpop.eup %896  ;;  %v565_v10 = vadd.f32 %v561_v4, %v549_v63  ;;  %v562_v11 = vmul.f32 %v558_v6, %v554_v2  ;;  %v551_v12 = vmul.f32 %v895_v7, %v893_v3  ;;  %v559_v13 = vsub.f32 1.0, %v895_v7 }
 0x141   : > { %v899_v14 = vpop.eup %898  ;;  %v556_v15 = vsub.f32 1.0, %v897_v9 }
 0x142   : > { %569 = vst [vmem:[%s292_s13] sm:$0xff] %v565_v10  ;;  %v573_v16 = vsub.f32 1.0, %v565_v10  ;;  %v566_v17 = vadd.f32 %v562_v11, %v550_v5  ;;  %v563_v18 = vmul.f32 %v559_v13, %v555_v8  ;;  %v552_v19 = vmul.f32 %v899_v14, %v897_v9 }
 0x143   : > { %v560_v20 = vsub.f32 1.0, %v899_v14 }
 0x144   : > { %570 = vst [vmem:[%s292_s13 + $0x8] sm:$0xff] %v566_v17  ;;  %v574_v21 = vsub.f32 1.0, %v566_v17  ;;  %v567_v22 = vadd.f32 %v563_v18, %v551_v12  ;;  %577 = vst [vmem:[%s1218_s26] sm:$0xff] %v573_v16 }
 0x145   : > { %v564_v23 = vmul.f32 %v560_v20, %v556_v15 }
 0x146   : > { %571 = vst [vmem:[%s292_s13 + $0x10] sm:$0xff] %v567_v22  ;;  %v575_v24 = vsub.f32 1.0, %v567_v22  ;;  %578 = vst [vmem:[%s1218_s26 + $0x8] sm:$0xff] %v574_v21 }
 0x147   : > { %v568_v25 = vadd.f32 %v564_v23, %v552_v19 }
 0x148   : > { %579 = vst [vmem:[%s1218_s26 + $0x10] sm:$0xff] %v575_v24 }
 0x149   : > { %572 = vst [vmem:[%s292_s13 + $0x18] sm:$0xff] %v568_v25  ;;  %v576_v26 = vsub.f32 1.0, %v568_v25 }
 0x14a   : > { %943 = shalt.err (!%p940_p4)
}
 0x14b   : > { %s944_s13 = scalar_lea.hbm %s1224_s17, 512  ;;  %s948_s15 = scalar_lea.hbm %s1320_s4, 1024 }
 0x14c   : > { %p945_p10 = scmp.ne.s32.totalorder %s1224_s17, %s944_s13  ;;  %p949_p2 = scmp.lt.u32.totalorder %s1224_s17, %s1320_s4 }
 0x14d   : > { %p950_p5 = scmp.lt.u32.totalorder %s948_s15, %s944_s13  ;;  %p952_p8 = scmp.lt.u32.totalorder %s944_s13, %s1224_s17 }
 0x14e   : > { %p946_p12 = pnand %p945_p10, %p1330_p11 }
 0x14f   : > { %p951_p9 = por %p950_p5, %p949_p2 }
 0x150   : > { %p947_p1 = pneg %p946_p12 }
 0x151   : > { %p953_p0 = por %p952_p8, %p951_p9 }
 0x153   : > { %p954_p7 = pnand %p953_p0, %p947_p1 }
 0x155   : > { %957 = shalt.err (!%p954_p7)
}
 0x156   : > { %s1050_s30 = smov 256   ;;  %s1051_s11 = smov 16   ;;  %580 = vst [vmem:[%s1218_s26 + $0x18] sm:$0xff] %v576_v26 }
 0x157   : > { %796 = dma.vmem_to_hbm [thread:$0]  (%p1330_p11), %s1226_s3, 512, %s1224_s17, %s582_s6, %s1050_s30, %s1050_s30, %s1051_s11  }
 0x158   : > { %s587_s10 = scalar_lea.sflag [#allocation8], %s1197_s16  ;;  %s958_s12 = scalar_lea.vmem %s1236_s23, 512 }
 0x159   : > { %p959_p13 = scmp.ne.s32.totalorder %s1236_s23, %s958_s12  ;;  %s1052_s13 = smov [#allocation7]  }
 0x15a   : > { %s962_s14 = sshll.u32 %s1052_s13, 4  ;;  %s963_s14 = int_to_ptr.vmem [resolvable:$false] %s962_s14 }
 0x15b   : > { %p960_p3 = pnand %p959_p13, %p1330_p11  ;;  %s964_s28 = scalar_lea.vmem %s963_s14, 1024 }
 0x15c   : > { %p965_p4 = scmp.lt.s32.totalorder %s1236_s23, %s963_s14  ;;  %p966_p10 = scmp.lt.s32.totalorder %s964_s28, %s958_s12 }
 0x15d   : > { %p961_p6 = pneg %p960_p3 }
 0x15e   : > { %p967_p12 = por %p966_p10, %p965_p4 }
 0x160   : > { %p968_p1 = pnand %p967_p12, %p961_p6 }
 0x162   : > { %971 = shalt.err (!%p968_p1)
}
 0x163   : > { %s972_s3 = scalar_lea.hbm %s1234_s29, 512  ;;  %s976_s6 = scalar_lea.hbm %s1321_s5, 1024 }
 0x164   : > { %p973_p2 = scmp.ne.s32.totalorder %s1234_s29, %s972_s3  ;;  %p977_p8 = scmp.lt.u32.totalorder %s1234_s29, %s1321_s5 }
 0x165   : > { %p978_p0 = scmp.lt.u32.totalorder %s976_s6, %s972_s3  ;;  %p980_p13 = scmp.lt.u32.totalorder %s972_s3, %s1234_s29 }
 0x166   : > { %p974_p5 = pnand %p973_p2, %p1330_p11 }
 0x167   : > { %p979_p7 = por %p978_p0, %p977_p8 }
 0x168   : > { %p975_p9 = pneg %p974_p5 }
 0x169   : > { %p981_p3 = por %p980_p13, %p979_p7 }
 0x16b   : > { %p982_p6 = pnand %p981_p3, %p975_p9 }
 0x16d   : > { %985 = shalt.err (!%p982_p6)
}
 0x16e   : > { %797 = dma.vmem_to_hbm [thread:$0]  (%p1330_p11), %s1236_s23, 512, %s1234_s29, %s587_s10, %s1050_s30, %s1050_s30, %s1051_s11  }
 0x16f PF: > { %s635_s19 = sand.u32 1, %s1024_s20   ;;  %p1331_p4 = scmp.ne.s32.totalorder %s1326_s9, 0 }
 0x170   : > { %p1332_p10 = scmp.ge.s32.totalorder %s1044_s25, 2  ;;  %s636_s12 = scalar_lea.sflag [#allocation5], %s635_s19 }
 0x172   : > { %p805_p12 = pnand %p1332_p10, %p1331_p4 }
 0x174   : > { %1015 = dma.done.wait (!%p805_p12), %s636_s12, 512  }
 0x175   : > { %1017 = vsyncadd (!%p805_p12), %s636_s12, 4294966784  ;;  %s645_s7 = scalar_lea.sflag [#allocation8], %s635_s19 }
 0x176   : > { %1019 = dma.done.wait (!%p805_p12), %s645_s7, 512  }
 0x177   : > { %1021 = vsyncadd (!%p805_p12), %s645_s7, 4294966784  ;;  %s27_s25 = sadd.s32 1, %s1044_s25   ;;  %s1333_s20 = smov %s1028_s21 }
 0x178   : > { %p24_p1 = scmp.ge.s32.totalorder %s27_s25, 4   ;;  %s1334_s21 = smov %s1032_s22 }
 0x179   : > { %s1335_s22 = smov %s1142_s8  ;;  %s1336_s23 = smov %s1040_s24 }
 0x17a   : > { %s1337_s24 = smov %s1339_s27  ;;  %26 = sbr.rel (!%p24_p1) target bundleno = 11 (0xb), region = 101 }
 0x181   :  { %650 = vsyncpa [#allocation4], 1 }
 0x182   :  { %652 = vsyncpa [#allocation4 + $0x1], 1 }
 0x183   :  { %653 = vsyncpa [#allocation5], 1 }
 0x184   :  { %655 = vsyncpa [#allocation5 + $0x1], 1 }
 0x185   :  { %656 = vsyncpa [#allocation8], 1 }
 0x186   :  { %658 = vsyncpa [#allocation8 + $0x1], 1 }

</bundles_post_ra>
